<compile_context>
chip_gen: v5e
topology: v5e:2x2
jax: 0.10.0
libtpu: 0.0.40
codegen_flags: <defaults>
</compile_context>

<pallas_src>
import jax
import jax.numpy as jnp
import numpy as np
from jax.experimental import pallas as pl
from jax.experimental.pallas import tpu as pltpu

# ---------------- model dimensions (small, consistent with the module) -------
B = 8              # batch
T = 8              # time frames (WavLM sequence length)
H = 128            # wavlm.config.hidden_size (synthetic small value)
P1 = 512           # projector hidden (fixed in the module)
P2 = 256           # projector output / embedding dim (fixed in the module)
NUM_CLASSES = 16   # num_classes
LOGITS_PAD = 128   # lane-dense padded logits width (multiple of 128)
BIAS_W = P1 + P2 + LOGITS_PAD   # 896
BN_EPS = 1e-5      # nn.BatchNorm1d default eps (eval-mode / running stats)


def _round_up(x, m):
    return ((x + m - 1) // m) * m


# ---------------------------- kernels ----------------------------------------
def _sv_head_full_kernel(x_ref, w1_ref, w2_ref, w3_ref, b_ref,
                         emb_ref, logits_ref, pooled_acc):
    """grid = (batch_blocks, time_blocks); time is a reduction ('arbitrary') axis."""
    t = pl.program_id(1)

    @pl.when(t == 0)
    def _():
        pooled_acc[...] = jnp.zeros_like(pooled_acc)

    # x block: (TT, BM, H) bf16, time-major -> the reduce is over the leading
    # axis (straight VPU adds, no XLU); accumulate in f32.
    pooled_acc[...] += jnp.sum(x_ref[...].astype(jnp.float32), axis=0)

    @pl.when(t == pl.num_programs(1) - 1)
    def _():
        pooled = pooled_acc[...]                                  # (BM, H) f32
        # Static (free) slices of the single concatenated bias vector.
        b1 = b_ref[:, 0:P1]
        b2 = b_ref[:, P1:P1 + P2]
        b3 = b_ref[:, P1 + P2:BIAS_W]
        # projector[0..2]: BN+mean-folded Linear(H,512) + ReLU (bf16 MXU, f32 acc)
        h1 = jnp.dot(pooled.astype(w1_ref.dtype), w1_ref[...],
                     preferred_element_type=jnp.float32) + b1
        h1 = jnp.maximum(h1, 0.0)
        # projector[3]: Linear(512, 256) -> embeddings
        emb = jnp.dot(h1.astype(w2_ref.dtype), w2_ref[...],
                      preferred_element_type=jnp.float32) + b2
        emb_ref[...] = emb
        # classifier: Linear(256, num_classes), zero-padded to 128 lanes so the
        # store is lane-dense (unmasked vst).
        logits_ref[...] = jnp.dot(emb.astype(w3_ref.dtype), w3_ref[...],
                                  preferred_element_type=jnp.float32) + b3


def _sv_head_emb_kernel(x_ref, w1_ref, w2_ref, b_ref, emb_ref, pooled_acc):
    """Embedding-only variant: skips the classifier matmul / logits output."""
    t = pl.program_id(1)

    @pl.when(t == 0)
    def _():
        pooled_acc[...] = jnp.zeros_like(pooled_acc)

    pooled_acc[...] += jnp.sum(x_ref[...].astype(jnp.float32), axis=0)

    @pl.when(t == pl.num_programs(1) - 1)
    def _():
        pooled = pooled_acc[...]
        b1 = b_ref[:, 0:P1]
        b2 = b_ref[:, P1:P1 + P2]
        h1 = jnp.dot(pooled.astype(w1_ref.dtype), w1_ref[...],
                     preferred_element_type=jnp.float32) + b1
        h1 = jnp.maximum(h1, 0.0)
        emb_ref[...] = jnp.dot(h1.astype(w2_ref.dtype), w2_ref[...],
                               preferred_element_type=jnp.float32) + b2


# ---------------------------- wrapper -----------------------------------------
def fold_params(params, seq_len):
    """One-time fold: EVAL-MODE (running-stats) BatchNorm + 1/T mean pooling
    into Linear1; pad classifier to 128 lanes; concatenate all biases; cast
    matmul weights to bf16.  NOTE: this folding is only valid for eval-mode BN
    (running statistics); do not reuse it for training-mode batch statistics."""
    (w1, b1, gamma, beta, rmean, rvar, w2, b2, w3, b3) = params
    scale = gamma * jax.lax.rsqrt(rvar + BN_EPS)                  # (1, P1)
    w1f = (w1 * scale) * (1.0 / seq_len)                          # (H, P1)
    b1f = (b1 - rmean) * scale + beta                             # (1, P1)
    w3p = jnp.zeros((P2, LOGITS_PAD), jnp.float32).at[:, :NUM_CLASSES].set(w3)
    b3p = jnp.zeros((1, LOGITS_PAD), jnp.float32).at[:, :NUM_CLASSES].set(b3)
    b_all = jnp.concatenate([b1f, b2, b3p], axis=1)               # (1, 896) f32
    return (w1f.astype(jnp.bfloat16),
            w2.astype(jnp.bfloat16),
            w3p.astype(jnp.bfloat16),
            b_all)


def _pick_blocks(bsz, seq_len):
    """Batch block (<=128 rows, multiple of 8) and time block sized so the
    (TT, BM, H) bf16 x tile stays <= ~2 MiB -> double-buffered tiles fit v7x's
    tighter 64 MiB VMEM as well as v5e/v6e's 128 MiB."""
    bm = min(128, _round_up(bsz, 8))
    tt = max(1, min(seq_len, (2 * 1024 * 1024) // (bm * H * 2)))
    return bm, tt


def speaker_verification_forward(hidden_states, folded_params,
                                 extract_embedding=True):
    """hidden_states: (B, T, H) — WavLM last_hidden_state stand-in.

    Matches the module: returns embeddings if extract_embedding else
    (logits, embeddings)."""
    w1f, w2b, w3p, b_all = folded_params
    bsz, seq_len, hid = hidden_states.shape
    assert hid == H

    bm, tt = _pick_blocks(bsz, seq_len)
    b_pad = _round_up(bsz, bm)
    t_pad = _round_up(seq_len, tt)

    # bf16 activations (halves x DMA bytes); time-major layout so the in-kernel
    # time reduce is over the leading axis; zero-pad batch/time to the block
    # sizes (zero rows do not change the pooled sum; the 1/T mean scale uses
    # the *unpadded* seq_len and is folded into w1).
    x = jnp.transpose(hidden_states.astype(jnp.bfloat16), (1, 0, 2))
    if (t_pad != seq_len) or (b_pad != bsz):
        x = jnp.pad(x, ((0, t_pad - seq_len), (0, b_pad - bsz), (0, 0)))

    grid = (b_pad // bm, t_pad // tt)

    x_spec = pl.BlockSpec((tt, bm, H), lambda i, t: (t, i, 0))
    # Constant index maps -> weights/bias DMA'd once, VMEM-resident across grid.
    w1_spec = pl.BlockSpec((H, P1), lambda i, t: (0, 0))
    w2_spec = pl.BlockSpec((P1, P2), lambda i, t: (0, 0))
    w3_spec = pl.BlockSpec((P2, LOGITS_PAD), lambda i, t: (0, 0))
    b_spec = pl.BlockSpec((1, BIAS_W), lambda i, t: (0, 0))
    emb_spec = pl.BlockSpec((bm, P2), lambda i, t: (i, 0))
    logits_spec = pl.BlockSpec((bm, LOGITS_PAD), lambda i, t: (i, 0))

    # Explicit VMEM budget: double-buffered x tile + resident weights/bias +
    # output tiles + pooled scratch, with 2x margin, clamped to [8, 64] MiB.
    vmem_need = (2 * tt * bm * H * 2
                 + 2 * 2 * (H * P1 + P1 * P2 + P2 * LOGITS_PAD)
                 + 4 * BIAS_W
                 + 2 * 4 * bm * (P2 + LOGITS_PAD)
                 + 4 * bm * H)
    compiler_params = pltpu.CompilerParams(
        dimension_semantics=("parallel", "arbitrary"),
        vmem_limit_bytes=int(min(max(2 * vmem_need, 8 << 20), 64 << 20)),
    )

    pool_flops = b_pad * t_pad * H
    mm_flops = 2 * b_pad * (H * P1 + P1 * P2)
    x_bytes = t_pad * b_pad * H * 2
    w_bytes = 2 * (H * P1 + P1 * P2) + 4 * BIAS_W
    scratch = [pltpu.VMEM((bm, H), jnp.float32)]

    if extract_embedding:
        cost = pl.CostEstimate(
            flops=pool_flops + mm_flops, transcendentals=0,
            bytes_accessed=x_bytes + w_bytes + b_pad * P2 * 4)
        emb = pl.pallas_call(
            _sv_head_emb_kernel,
            out_shape=jax.ShapeDtypeStruct((b_pad, P2), jnp.float32),
            grid=grid,
            in_specs=[x_spec, w1_spec, w2_spec, b_spec],
            out_specs=emb_spec,
            scratch_shapes=scratch,
            compiler_params=compiler_params,
            cost_estimate=cost,
        )(x, w1f, w2b, b_all)
        return emb[:bsz]

    cost = pl.CostEstimate(
        flops=pool_flops + mm_flops + 2 * b_pad * P2 * LOGITS_PAD,
        transcendentals=0,
        bytes_accessed=(x_bytes + w_bytes + 2 * P2 * LOGITS_PAD
                        + b_pad * (P2 + LOGITS_PAD) * 4))
    emb, logits_pad = pl.pallas_call(
        _sv_head_full_kernel,
        out_shape=(jax.ShapeDtypeStruct((b_pad, P2), jnp.float32),
                   jax.ShapeDtypeStruct((b_pad, LOGITS_PAD), jnp.float32)),
        grid=grid,
        in_specs=[x_spec, w1_spec, w2_spec, w3_spec, b_spec],
        out_specs=(emb_spec, logits_spec),
        scratch_shapes=scratch,
        compiler_params=compiler_params,
        cost_estimate=cost,
    )(x, w1f, w2b, w3p, b_all)
    # TODO(synk): consumers that accept lane-padded logits could take
    # logits_pad[:bsz] directly and skip this post-kernel slice launch.
    logits = logits_pad[:bsz, :NUM_CLASSES]
    return logits, emb[:bsz]


# ---------------------------- test harness ------------------------------------
def _init_params(key):
    ks = jax.random.split(key, 8)
    w1 = jax.random.normal(ks[0], (H, P1), jnp.float32) * 0.02
    b1 = jax.random.normal(ks[1], (1, P1), jnp.float32) * 0.01
    gamma = 1.0 + 0.1 * jax.random.normal(ks[2], (1, P1), jnp.float32)
    beta = 0.01 * jax.random.normal(ks[3], (1, P1), jnp.float32)
    rmean = 0.05 * jax.random.normal(ks[4], (1, P1), jnp.float32)
    rvar = jnp.abs(1.0 + 0.1 * jax.random.normal(ks[5], (1, P1), jnp.float32))
    w2 = jax.random.normal(ks[6], (P1, P2), jnp.float32) * 0.02
    b2 = jnp.zeros((1, P2), jnp.float32)
    w3 = jax.random.normal(ks[7], (P2, NUM_CLASSES), jnp.float32) * 0.02
    b3 = jnp.zeros((1, NUM_CLASSES), jnp.float32)
    return (w1, b1, gamma, beta, rmean, rvar, w2, b2, w3, b3)


def _reference_forward(x, params):
    (w1, b1, gamma, beta, rmean, rvar, w2, b2, w3, b3) = params
    pooled = jnp.mean(x, axis=1)
    h1 = pooled @ w1 + b1
    h1 = (h1 - rmean) / jnp.sqrt(rvar + BN_EPS) * gamma + beta
    h1 = jnp.maximum(h1, 0.0)
    emb = h1 @ w2 + b2
    logits = emb @ w3 + b3
    return emb, logits


if __name__ == "__main__":
    key = jax.random.PRNGKey(0)
    k_x, k_p = jax.random.split(key)

    # Synthetic WavLM last_hidden_state: (B, T, H)
    x = jax.random.normal(k_x, (B, T, H), jnp.float32)
    params = _init_params(k_p)
    folded = fold_params(params, seq_len=T)

    # extract_embedding=False -> (logits, embeddings)
    logits, emb = speaker_verification_forward(x, folded, extract_embedding=False)
    emb = jax.block_until_ready(emb)
    logits = jax.block_until_ready(logits)

    # extract_embedding=True -> embeddings only
    emb_only = jax.block_until_ready(
        speaker_verification_forward(x, folded, extract_embedding=True))

    ref_emb, ref_logits = _reference_forward(x, params)
    # bf16 activations + bf16 matmul operands (f32 accumulation) -> loosened
    # tolerances vs the pure-f32 reference.
    assert np.allclose(np.asarray(emb), np.asarray(ref_emb),
                       atol=1e-2, rtol=5e-2)
    assert np.allclose(np.asarray(logits), np.asarray(ref_logits),
                       atol=1e-2, rtol=5e-2)
    assert np.allclose(np.asarray(emb_only), np.asarray(emb), atol=1e-5)
    assert emb.shape == (B, P2) and logits.shape == (B, NUM_CLASSES)

    # Ragged-batch path (bsz not a multiple of 8): exercises zero padding.
    x5 = x[:5]
    emb5 = jax.block_until_ready(
        speaker_verification_forward(x5, folded, extract_embedding=True))
    ref_emb5, _ = _reference_forward(x5, params)
    assert emb5.shape == (5, P2)
    assert np.allclose(np.asarray(emb5), np.asarray(ref_emb5),
                       atol=1e-2, rtol=5e-2)

    print("KERNEL_OK")
</pallas_src>

<mosaic_0001>
module attributes {stable_mosaic.version = 11 : i64} {
  func.func @_sv_head_full_kernel(%arg0: i32, %arg1: i32, %arg2: memref<8x8x128xbf16, #tpu.memory_space<vmem>>, %arg3: memref<128x512xbf16, #tpu.memory_space<vmem>>, %arg4: memref<512x256xbf16, #tpu.memory_space<vmem>>, %arg5: memref<256x128xbf16, #tpu.memory_space<vmem>>, %arg6: memref<1x896xf32, #tpu.memory_space<vmem>>, %arg7: memref<8x256xf32, #tpu.memory_space<vmem>>, %arg8: memref<8x128xf32, #tpu.memory_space<vmem>>, %arg9: memref<8x128xf32, #tpu.memory_space<vmem>>) attributes {dimension_semantics = [#tpu.dimension_semantics<parallel>, #tpu.dimension_semantics<arbitrary>], iteration_bounds = array<i64: 1, 1>, scalar_prefetch = 0 : i64, scratch_operands = 1 : i64, tpu.core_type = #tpu.core_type<tc>, window_params = [{transform_indices = @transform_0, window_bounds = array<i64: 8, 8, 128>}, {pipeline_mode = #tpu.pipeline_mode<synchronous>, transform_indices = @transform_1, window_bounds = array<i64: 128, 512>}, {pipeline_mode = #tpu.pipeline_mode<synchronous>, transform_indices = @transform_2, window_bounds = array<i64: 512, 256>}, {pipeline_mode = #tpu.pipeline_mode<synchronous>, transform_indices = @transform_3, window_bounds = array<i64: 256, 128>}, {pipeline_mode = #tpu.pipeline_mode<synchronous>, transform_indices = @transform_4, window_bounds = array<i64: 1, 896>}, {transform_indices = @transform_5, window_bounds = array<i64: 8, 256>}, {transform_indices = @transform_6, window_bounds = array<i64: 8, 128>}]} {
    %c0_i32 = arith.constant 0 : i32
    %0 = arith.cmpi eq, %arg1, %c0_i32 : i32
    %1 = arith.extui %0 : i1 to i32
    %c0_i32_0 = arith.constant 0 : i32
    %2 = arith.cmpi ne, %1, %c0_i32_0 : i32
    scf.if %2 {
      %cst_9 = arith.constant 0.000000e+00 : f32
      %12 = vector.broadcast %cst_9 : f32 to vector<8x128xf32>
      %c0_10 = arith.constant 0 : index
      %c0_11 = arith.constant 0 : index
      %13 = vector.load %arg9[%c0_10, %c0_11] : memref<8x128xf32, #tpu.memory_space<vmem>>, vector<8x128xf32>
      tpu.vector_store %arg9[%c0_10, %c0_11], %12 {strides = array<i32>} : memref<8x128xf32, #tpu.memory_space<vmem>>, vector<8x128xf32>,
    } else {
    }
    %c0 = arith.constant 0 : index
    %c0_1 = arith.constant 0 : index
    %3 = vector.load %arg9[%c0, %c0_1] : memref<8x128xf32, #tpu.memory_space<vmem>>, vector<8x128xf32>
    %c0_2 = arith.constant 0 : index
    %c0_3 = arith.constant 0 : index
    %c0_4 = arith.constant 0 : index
    %4 = vector.load %arg2[%c0_2, %c0_3, %c0_4] : memref<8x8x128xbf16, #tpu.memory_space<vmem>>, vector<8x8x128xbf16>
    %5 = arith.extf %4 : vector<8x8x128xbf16> to vector<8x8x128xf32>
    %cst = arith.constant dense<0.000000e+00> : vector<8x128xf32>
    %6 = vector.multi_reduction <add>, %5, %cst [0] : vector<8x8x128xf32> to vector<8x128xf32>
    %7 = arith.addf %3, %6 : vector<8x128xf32>
    %c0_5 = arith.constant 0 : index
    %c0_6 = arith.constant 0 : index
    %8 = vector.load %arg9[%c0_5, %c0_6] : memref<8x128xf32, #tpu.memory_space<vmem>>, vector<8x128xf32>
    tpu.vector_store %arg9[%c0_5, %c0_6], %7 {strides = array<i32>} : memref<8x128xf32, #tpu.memory_space<vmem>>, vector<8x128xf32>,
    %c0_i32_7 = arith.constant 0 : i32
    %9 = arith.cmpi eq, %arg1, %c0_i32_7 : i32
    %10 = arith.extui %9 : i1 to i32
    %c0_i32_8 = arith.constant 0 : i32
    %11 = arith.cmpi ne, %10, %c0_i32_8 : i32
    scf.if %11 {
      %c0_9 = arith.constant 0 : index
      %c0_10 = arith.constant 0 : index
      %12 = vector.load %arg9[%c0_9, %c0_10] : memref<8x128xf32, #tpu.memory_space<vmem>>, vector<8x128xf32>
      %c0_11 = arith.constant 0 : index
      %c0_12 = arith.constant 0 : index
      %13 = vector.load %arg6[%c0_11, %c0_12] : memref<1x896xf32, #tpu.memory_space<vmem>>, vector<1x512xf32>
      %c0_13 = arith.constant 0 : index
      %c512 = arith.constant 512 : index
      %14 = vector.load %arg6[%c0_13, %c512] : memref<1x896xf32, #tpu.memory_space<vmem>>, vector<1x256xf32>
      %c0_14 = arith.constant 0 : index
      %c768 = arith.constant 768 : index
      %15 = vector.load %arg6[%c0_14, %c768] : memref<1x896xf32, #tpu.memory_space<vmem>>, vector<1x128xf32>
      %16 = arith.truncf %12 : vector<8x128xf32> to vector<8x128xbf16>
      %c0_15 = arith.constant 0 : index
      %c0_16 = arith.constant 0 : index
      %17 = vector.load %arg3[%c0_15, %c0_16] : memref<128x512xbf16, #tpu.memory_space<vmem>>, vector<128x512xbf16>
      %cst_17 = arith.constant dense<0.000000e+00> : vector<8x512xf32>
      %18 = tpu.matmul %16, %17, %cst_17 {dimension_numbers = #tpu.dot_dimension_numbers<[1], [0], [0], [1], [0, 0, 1, 1], [], []>} : vector<8x128xbf16>, vector<128x512xbf16>, vector<8x512xf32> -> vector<8x512xf32>
      %19 = vector.broadcast %13 : vector<1x512xf32> to vector<8x512xf32>
      %20 = arith.addf %18, %19 : vector<8x512xf32>
      %cst_18 = arith.constant 0.000000e+00 : f32
      %21 = vector.broadcast %cst_18 : f32 to vector<8x512xf32>
      %22 = arith.maximumf %20, %21 : vector<8x512xf32>
      %23 = arith.truncf %22 : vector<8x512xf32> to vector<8x512xbf16>
      %c0_19 = arith.constant 0 : index
      %c0_20 = arith.constant 0 : index
      %24 = vector.load %arg4[%c0_19, %c0_20] : memref<512x256xbf16, #tpu.memory_space<vmem>>, vector<512x256xbf16>
      %cst_21 = arith.constant dense<0.000000e+00> : vector<8x256xf32>
      %25 = tpu.matmul %23, %24, %cst_21 {dimension_numbers = #tpu.dot_dimension_numbers<[1], [0], [0], [1], [0, 0, 1, 1], [], []>} : vector<8x512xbf16>, vector<512x256xbf16>, vector<8x256xf32> -> vector<8x256xf32>
      %26 = vector.broadcast %14 : vector<1x256xf32> to vector<8x256xf32>
      %27 = arith.addf %25, %26 : vector<8x256xf32>
      %c0_22 = arith.constant 0 : index
      %c0_23 = arith.constant 0 : index
      %28 = vector.load %arg7[%c0_22, %c0_23] : memref<8x256xf32, #tpu.memory_space<vmem>>, vector<8x256xf32>
      tpu.vector_store %arg7[%c0_22, %c0_23], %27 {strides = array<i32>} : memref<8x256xf32, #tpu.memory_space<vmem>>, vector<8x256xf32>,
      %29 = arith.truncf %27 : vector<8x256xf32> to vector<8x256xbf16>
      %c0_24 = arith.constant 0 : index
      %c0_25 = arith.constant 0 : index
      %30 = vector.load %arg5[%c0_24, %c0_25] : memref<256x128xbf16, #tpu.memory_space<vmem>>, vector<256x128xbf16>
      %cst_26 = arith.constant dense<0.000000e+00> : vector<8x128xf32>
      %31 = tpu.matmul %29, %30, %cst_26 {dimension_numbers = #tpu.dot_dimension_numbers<[1], [0], [0], [1], [0, 0, 1, 1], [], []>} : vector<8x256xbf16>, vector<256x128xbf16>, vector<8x128xf32> -> vector<8x128xf32>
      %32 = vector.broadcast %15 : vector<1x128xf32> to vector<8x128xf32>
      %33 = arith.addf %31, %32 : vector<8x128xf32>
      %c0_27 = arith.constant 0 : index
      %c0_28 = arith.constant 0 : index
      %34 = vector.load %arg8[%c0_27, %c0_28] : memref<8x128xf32, #tpu.memory_space<vmem>>, vector<8x128xf32>
      tpu.vector_store %arg8[%c0_27, %c0_28], %33 {strides = array<i32>} : memref<8x128xf32, #tpu.memory_space<vmem>>, vector<8x128xf32>,
    } else {
    }
    return
  }
  func.func @transform_0(%arg0: i32, %arg1: i32) -> (i32, i32, i32) {
    %c0_i32 = arith.constant 0 : i32
    %c0_i32_0 = arith.constant 0 : i32
    return %arg1, %arg0, %c0_i32 : i32, i32, i32
  }
  func.func @transform_1(%arg0: i32, %arg1: i32) -> (i32, i32) {
    %c0_i32 = arith.constant 0 : i32
    %c0_i32_0 = arith.constant 0 : i32
    %c0_i32_1 = arith.constant 0 : i32
    return %c0_i32, %c0_i32_0 : i32, i32
  }
  func.func @transform_2(%arg0: i32, %arg1: i32) -> (i32, i32) {
    %c0_i32 = arith.constant 0 : i32
    %c0_i32_0 = arith.constant 0 : i32
    %c0_i32_1 = arith.constant 0 : i32
    return %c0_i32, %c0_i32_0 : i32, i32
  }
  func.func @transform_3(%arg0: i32, %arg1: i32) -> (i32, i32) {
    %c0_i32 = arith.constant 0 : i32
    %c0_i32_0 = arith.constant 0 : i32
    %c0_i32_1 = arith.constant 0 : i32
    return %c0_i32, %c0_i32_0 : i32, i32
  }
  func.func @transform_4(%arg0: i32, %arg1: i32) -> (i32, i32) {
    %c0_i32 = arith.constant 0 : i32
    %c0_i32_0 = arith.constant 0 : i32
    %c0_i32_1 = arith.constant 0 : i32
    return %c0_i32, %c0_i32_0 : i32, i32
  }
  func.func @transform_5(%arg0: i32, %arg1: i32) -> (i32, i32) {
    %c0_i32 = arith.constant 0 : i32
    %c0_i32_0 = arith.constant 0 : i32
    return %arg0, %c0_i32 : i32, i32
  }
  func.func @transform_6(%arg0: i32, %arg1: i32) -> (i32, i32) {
    %c0_i32 = arith.constant 0 : i32
    %c0_i32_0 = arith.constant 0 : i32
    return %arg0, %c0_i32 : i32, i32
  }
}

</mosaic_0001>

<bundles_post_ra>
// kernel: tpu_custom_call.1
= control target key start
LH: loop header
LB: loop body
LE: loop exit
PB: predicated region body
PF: predicated region fallthrough
CT: control target
= control target key end

     0   :  { %12 = vsyncpa [#allocation4], 0  ;;  %s1930_s0 = inlined_call_operand.hbm [shape: bf16[8,8,128], index: 0, kind: input, shape index: {}]   ;;  %s1931_s1 = inlined_call_operand.hbm [shape: bf16[128,512], index: 1, kind: input, shape index: {}]   ;;  %s1932_s2 = inlined_call_operand.hbm [shape: bf16[512,256], index: 2, kind: input, shape index: {}]   ;;  %s1933_s3 = inlined_call_operand.hbm [shape: bf16[256,128], index: 3, kind: input, shape index: {}]   ;;  %s1934_s4 = inlined_call_operand.hbm [shape: f32[1,896], index: 4, kind: input, shape index: {}]   ;;  %s1935_s5 = inlined_call_operand.hbm [shape: f32[8,256], index: 5, kind: output, shape index: {0}]   ;;  %s1936_s6 = inlined_call_operand.hbm [shape: f32[8,128], index: 6, kind: output, shape index: {1}]  }
   0x1   :  { %13 = vsyncpa [#allocation7], 0 }
   0x2   :  { %14 = vsyncpa [#allocation10], 0 }
   0x3   :  { %15 = vsyncpa [#allocation5], 0  ;;  %s34_s23 = sshll.u32 %s1931_s1, 4  ;;  %s35_s23 = int_to_ptr.hbm [resolvable:$true] %s34_s23 }
   0x4   :  { %16 = vsyncpa [#allocation14], 0  ;;  %s1861_s24 = smov [#allocation6]   ;;  %s1862_s26 = smov 256  }
   0x5   :  { %s36_s25 = sshll.u32 %s1861_s24, 4  ;;  %s1863_s27 = smov 16   ;;  %s37_s25 = int_to_ptr.vmem [resolvable:$true] %s36_s25 }
   0x6   :  { %42 = dma.hbm_to_vmem [thread:$0]  %s35_s23, 4096, %s37_s25, [#allocation7], %s1862_s26, %s1862_s26, %s1863_s27  }
   0x7   :  { %s60_s30 = sshll.u32 %s1933_s3, 4  ;;  %s1864_s7 = smov [#allocation9]   ;;  %s61_s30 = int_to_ptr.hbm [resolvable:$true] %s60_s30 }
   0x8   :  { %s62_s8 = sshll.u32 %s1864_s7, 4  ;;  %s21_s11 = sshll.u32 %s1930_s0, 4  ;;  %s63_s8 = int_to_ptr.vmem [resolvable:$true] %s62_s8  ;;  %s22_s11 = int_to_ptr.hbm [resolvable:$true] %s21_s11 }
   0x9   :  { %s1865_s1 = smov 64   ;;  %s1866_s12 = smov 4  }
   0xa   :  { %68 = dma.hbm_to_vmem [thread:$0]  %s61_s30, 2048, %s63_s8, [#allocation10], %s1865_s1, %s1865_s1, %s1866_s12  }
   0xb   :  { %s47_s15 = sshll.u32 %s1932_s2, 4  ;;  %s1867_s16 = smov [#allocation3]   ;;  %s48_s15 = int_to_ptr.hbm [resolvable:$true] %s47_s15 }
   0xc   :  { %s23_s17 = sshll.u32 %s1867_s16, 4  ;;  %s1868_s3 = smov [#allocation8]   ;;  %s24_s17 = int_to_ptr.vmem [resolvable:$true] %s23_s17 }
   0xd   :  { %29 = dma.hbm_to_vmem [thread:$0]  %s22_s11, 512, %s24_s17, [#allocation4], %s1865_s1, %s1865_s1, %s1866_s12  }
   0xe   :  { %s49_s18 = sshll.u32 %s1868_s3, 4  ;;  %s1869_s19 = smov 128   ;;  %s50_s18 = int_to_ptr.vmem [resolvable:$true] %s49_s18 }
   0xf   :  { %s1870_s20 = smov 8   ;;  %s74_s22 = sshll.u32 %s1934_s4, 4  ;;  %s75_s22 = int_to_ptr.hbm [resolvable:$true] %s74_s22 }
  0x10   :  { %55 = dma.hbm_to_vmem [thread:$0]  %s48_s15, 8192, %s50_s18, [#allocation7], %s1869_s19, %s1869_s19, %s1870_s20  }
  0x11   :  { %s1871_s23 = smov [#allocation11]  }
  0x12   :  { %s76_s24 = sshll.u32 %s1871_s23, 4  ;;  %s77_s24 = int_to_ptr.vmem [resolvable:$true] %s76_s24 }
  0x13   :  { %79 = dma.hbm_to_vmem [thread:$0]  %s75_s22, 112, %s77_s24, [#allocation10]  }
  0x14   :  { %1851 = dma.done.wait [#allocation4], 512  }
  0x15   :  { %1852 = vsyncadd [#allocation4], 4294966784 }
  0x16   :  { %1853 = dma.done.wait [#allocation7], 12288  }
  0x17   :  { %1854 = vsyncadd [#allocation7], 4294955008 }
  0x18   :  { %1855 = dma.done.wait [#allocation10], 2160  }
  0x19   :  { %1856 = vsyncadd [#allocation10], 4294965136  ;;  %v1204_v0 = vld [vmem:[#allocation6 + $0xe0] sm:$0xf]  ;;  %v1568_v1 = vld [vmem:[#allocation6 + $0xec] sm:$0xf0] }
  0x1a   :  { %v1566_v2 = vld [vmem:[#allocation6 + $0xe4] sm:$0xf]  ;;  %v1205_v3 = vor.u32 %v1568_v1, %v1204_v0  ;;  %v1206_v4 = vld [vmem:[#allocation6 + $0xf0] sm:$0xf0]  ;;  %v1212_v5 = vld [vmem:[#allocation6 + $0xe8] sm:$0xf] }
  0x1b   :  { %v1569_v6 = vld [vmem:[#allocation6 + $0xf4] sm:$0xf0]  ;;  %v1209_v7 = vor.u32 %v1566_v2, %v1206_v4  ;;  %v1567_v9 = vld [vmem:[#allocation6 + $0xec] sm:$0xf]  ;;  %v1214_v10 = vld [vmem:[#allocation6 + $0xf8] sm:$0xf0] }
  0x1c   :  { %v1213_v8 = vor.u32 %v1569_v6, %v1212_v5  ;;  %v1188_v11 = vld [vmem:[#allocation6 + $0xc0] sm:$0xf]  ;;  %340 = vmatpush.bf16.msra.mxu0 %v1205_v3  ;;  %v1217_v12 = vor.u32 %v1567_v9, %v1214_v10  ;;  %v1564_v13 = vld [vmem:[#allocation6 + $0xcc] sm:$0xf0]  ;;  %v1562_v14 = vld [vmem:[#allocation6 + $0xc4] sm:$0xf] }
  0x1d   :  { %v1190_v15 = vld [vmem:[#allocation6 + $0xd0] sm:$0xf0]  ;;  %353 = vmatpush.bf16.msra.mxu1 %v1209_v7  ;;  %v1189_v16 = vor.u32 %v1564_v13, %v1188_v11  ;;  %v1196_v18 = vld [vmem:[#allocation6 + $0xc8] sm:$0xf]  ;;  %v1565_v19 = vld [vmem:[#allocation6 + $0xd4] sm:$0xf0] }
  0x1e   :  { %366 = vmatpush.bf16.msra.mxu2 %v1213_v8  ;;  %v1193_v17 = vor.u32 %v1562_v14, %v1190_v15  ;;  %v1563_v20 = vld [vmem:[#allocation6 + $0xcc] sm:$0xf]  ;;  %379 = vmatpush.bf16.msra.mxu3 %v1217_v12  ;;  %v1197_v21 = vor.u32 %v1565_v19, %v1196_v18  ;;  %v1198_v22 = vld [vmem:[#allocation6 + $0xd8] sm:$0xf0]  ;;  %v1172_v23 = vld [vmem:[#allocation6 + $0xa0] sm:$0xf] }
  0x1f   :  { %v1560_v24 = vld [vmem:[#allocation6 + $0xac] sm:$0xf0]  ;;  %v1201_v25 = vor.u32 %v1563_v20, %v1198_v22  ;;  %v1558_v26 = vld [vmem:[#allocation6 + $0xa4] sm:$0xf]  ;;  %v1174_v27 = vld [vmem:[#allocation6 + $0xb0] sm:$0xf0] }
  0x20   :  { %v1180_v28 = vld [vmem:[#allocation6 + $0xa8] sm:$0xf]  ;;  %341 = vmatpush.bf16.msra.mxu0 %v1189_v16  ;;  %v1173_v29 = vor.u32 %v1560_v24, %v1172_v23  ;;  %v1561_v30 = vld [vmem:[#allocation6 + $0xb4] sm:$0xf0]  ;;  %v1559_v31 = vld [vmem:[#allocation6 + $0xac] sm:$0xf]  ;;  %v1177_v33 = vor.u32 %v1558_v26, %v1174_v27 }
  0x21   :  { %v1182_v32 = vld [vmem:[#allocation6 + $0xb8] sm:$0xf0]  ;;  %354 = vmatpush.bf16.msra.mxu1 %v1193_v17  ;;  %v1181_v34 = vor.u32 %v1561_v30, %v1180_v28  ;;  %v1156_v35 = vld [vmem:[#allocation6 + $0x80] sm:$0xf]  ;;  %v1556_v36 = vld [vmem:[#allocation6 + $0x8c] sm:$0xf0] }
  0x22   :  { %367 = vmatpush.bf16.msra.mxu2 %v1197_v21  ;;  %v1554_v37 = vld [vmem:[#allocation6 + $0x84] sm:$0xf]  ;;  %380 = vmatpush.bf16.msra.mxu3 %v1201_v25  ;;  %v1185_v38 = vor.u32 %v1559_v31, %v1182_v32  ;;  %v1158_v39 = vld [vmem:[#allocation6 + $0x90] sm:$0xf0]  ;;  %v1164_v40 = vld [vmem:[#allocation6 + $0x88] sm:$0xf]  ;;  %v1157_v44 = vor.u32 %v1556_v36, %v1156_v35 }
  0x23   :  { %v1557_v41 = vld [vmem:[#allocation6 + $0x94] sm:$0xf0]  ;;  %v1555_v42 = vld [vmem:[#allocation6 + $0x8c] sm:$0xf]  ;;  %v1166_v43 = vld [vmem:[#allocation6 + $0x98] sm:$0xf0]  ;;  %v1161_v45 = vor.u32 %v1554_v37, %v1158_v39 }
  0x24   :  { %342 = vmatpush.bf16.msra.mxu0 %v1173_v29  ;;  %v1165_v46 = vor.u32 %v1557_v41, %v1164_v40  ;;  %v1140_v47 = vld [vmem:[#allocation6 + $0x60] sm:$0xf]  ;;  %v1552_v48 = vld [vmem:[#allocation6 + $0x6c] sm:$0xf0]  ;;  %v1550_v49 = vld [vmem:[#allocation6 + $0x64] sm:$0xf]  ;;  %v1169_v50 = vor.u32 %v1555_v42, %v1166_v43 }
  0x25   :  { %355 = vmatpush.bf16.msra.mxu1 %v1177_v33  ;;  %v1142_v51 = vld [vmem:[#allocation6 + $0x70] sm:$0xf0]  ;;  %v1148_v52 = vld [vmem:[#allocation6 + $0x68] sm:$0xf]  ;;  %v1553_v53 = vld [vmem:[#allocation6 + $0x74] sm:$0xf0]  ;;  %v1141_v56 = vor.u32 %v1552_v48, %v1140_v47 }
  0x26   :  { %368 = vmatpush.bf16.msra.mxu2 %v1181_v34  ;;  %381 = vmatpush.bf16.msra.mxu3 %v1185_v38  ;;  %v1551_v54 = vld [vmem:[#allocation6 + $0x6c] sm:$0xf]  ;;  %v1150_v55 = vld [vmem:[#allocation6 + $0x78] sm:$0xf0]  ;;  %v1145_v57 = vor.u32 %v1550_v49, %v1142_v51  ;;  %v1149_v58 = vor.u32 %v1553_v53, %v1148_v52  ;;  %v1124_v59 = vld [vmem:[#allocation6 + $0x40] sm:$0xf] }
  0x27   :  { %v1548_v60 = vld [vmem:[#allocation6 + $0x4c] sm:$0xf0]  ;;  %v1546_v61 = vld [vmem:[#allocation6 + $0x44] sm:$0xf]  ;;  %v1153_v62 = vor.u32 %v1551_v54, %v1150_v55  ;;  %v1126_v63 = vld [vmem:[#allocation6 + $0x50] sm:$0xf0] }
  0x28   :  { %343 = vmatpush.bf16.msra.mxu0 %v1157_v44  ;;  %v1132_v0 = vld [vmem:[#allocation6 + $0x48] sm:$0xf]  ;;  %v1549_v1 = vld [vmem:[#allocation6 + $0x54] sm:$0xf0]  ;;  %v1547_v2 = vld [vmem:[#allocation6 + $0x4c] sm:$0xf]  ;;  %v1125_v4 = vor.u32 %v1548_v60, %v1124_v59  ;;  %v1129_v7 = vor.u32 %v1546_v61, %v1126_v63 }
  0x29   :  { %356 = vmatpush.bf16.msra.mxu1 %v1161_v45  ;;  %v1134_v3 = vld [vmem:[#allocation6 + $0x58] sm:$0xf0]  ;;  %v1108_v5 = vld [vmem:[#allocation6 + $0x20] sm:$0xf]  ;;  %v1544_v6 = vld [vmem:[#allocation6 + $0x2c] sm:$0xf0]  ;;  %v1133_v8 = vor.u32 %v1549_v1, %v1132_v0 }
  0x2a   :  { %369 = vmatpush.bf16.msra.mxu2 %v1165_v46  ;;  %382 = vmatpush.bf16.msra.mxu3 %v1169_v50  ;;  %v1542_v9 = vld [vmem:[#allocation6 + $0x24] sm:$0xf]  ;;  %v1110_v10 = vld [vmem:[#allocation6 + $0x30] sm:$0xf0]  ;;  %v1116_v11 = vld [vmem:[#allocation6 + $0x28] sm:$0xf]  ;;  %v1137_v12 = vor.u32 %v1547_v2, %v1134_v3  ;;  %v1109_v22 = vor.u32 %v1544_v6, %v1108_v5 }
  0x2b   :  { %v1545_v13 = vld [vmem:[#allocation6 + $0x34] sm:$0xf0]  ;;  %v1651_v14 = vld [vmem:[#allocation3] sm:$0xff]   ;;  %v1666_v15 = vld [vmem:[#allocation3 + $0x8] sm:$0xff]   ;;  %v1113_v26 = vor.u32 %v1542_v9, %v1110_v10  ;;  %s1872_s2 = smov [#allocation12]   ;;  %s1062_s27 = sshll.u32 %s1935_s5, 4  ;;  %s1063_s27 = int_to_ptr.hbm [resolvable:$true] %s1062_s27 }
  0x2c   :  { %344 = vmatpush.bf16.msra.mxu0 %v1141_v56  ;;  %v1543_v16 = vld [vmem:[#allocation6 + $0x2c] sm:$0xf]  ;;  %v1118_v17 = vld [vmem:[#allocation6 + $0x38] sm:$0xf0]  ;;  %v1092_v18 = vld [vmem:[#allocation6] sm:$0xf]  ;;  %v1652_v19 = vunpack.c.l.bf16 %v1651_v14  ;;  %v1653_v20 = vunpack.c.h.bf16 %v1651_v14  ;;  %v1656_v21 = vunpack.c.l.bf16 %v1666_v15  ;;  %v1117_v27 = vor.u32 %v1545_v13, %v1116_v11 }
  0x2d   :  { %357 = vmatpush.bf16.msra.mxu1 %v1145_v57  ;;  %v1540_v23 = vld [vmem:[#allocation6 + $0xc] sm:$0xf0]  ;;  %v1538_v24 = vld [vmem:[#allocation6 + $0x4] sm:$0xf]  ;;  %v1094_v28 = vld [vmem:[#allocation6 + $0x10] sm:$0xf0]  ;;  %v1657_v31 = vunpack.c.h.bf16 %v1666_v15  ;;  %v1121_v33 = vor.u32 %v1543_v16, %v1118_v17 }
  0x2e   :  { %370 = vmatpush.bf16.msra.mxu2 %v1149_v58  ;;  %383 = vmatpush.bf16.msra.mxu3 %v1153_v62  ;;  %v1667_v25 = vld [vmem:[#allocation3 + $0x10] sm:$0xff]   ;;  %v1100_v29 = vld [vmem:[#allocation6 + $0x8] sm:$0xf]  ;;  %v1541_v30 = vld [vmem:[#allocation6 + $0x14] sm:$0xf0]  ;;  %v122_v32 = vadd.f32 %v1653_v20, %v1652_v19  ;;  %v1093_v42 = vor.u32 %v1540_v23, %v1092_v18  ;;  %v1097_v46 = vor.u32 %v1538_v24, %v1094_v28  ;;  %s1060_s4 = sshll.u32 %s1872_s2, 4  ;;  %s1061_s4 = int_to_ptr.vmem [resolvable:$true] %s1060_s4 }
  0x2f   :  { %v1539_v34 = vld [vmem:[#allocation6 + $0xc] sm:$0xf]  ;;  %v1102_v35 = vld [vmem:[#allocation6 + $0x18] sm:$0xf0]  ;;  %v1660_v37 = vunpack.c.l.bf16 %v1667_v25  ;;  %v1276_v39 = vld [vmem:[#allocation8 + $0x70] sm:$0xf]  ;;  %v1101_v47 = vor.u32 %v1541_v30, %v1100_v29  ;;  %v1661_v48 = vunpack.c.h.bf16 %v1667_v25 }
  0x30   :  { %345 = vmatpush.bf16.msra.mxu0 %v1125_v4  ;;  %v1668_v36 = vld [vmem:[#allocation3 + $0x18] sm:$0xff]   ;;  %v123_v38 = vadd.f32 %v1656_v21, %v122_v32  ;;  %v1340_v41 = vld [vmem:[#allocation8 + $0xf0] sm:$0xf]  ;;  %v1105_v52 = vor.u32 %v1539_v34, %v1102_v35  ;;  %v1268_v57 = vld [vmem:[#allocation8 + $0x60] sm:$0xf]  ;;  %s1873_s28 = smov [#allocation13]  }
  0x31   :  { %358 = vmatpush.bf16.msra.mxu1 %v1129_v7  ;;  %v1585_v40 = vld [vmem:[#allocation8 + $0x74] sm:$0xf0]  ;;  %v1404_v44 = vld [vmem:[#allocation8 + $0x170] sm:$0xf]  ;;  %v1664_v54 = vunpack.c.l.bf16 %v1668_v36  ;;  %v1583_v58 = vld [vmem:[#allocation8 + $0x64] sm:$0xf0]  ;;  %v1665_v1 = vunpack.c.h.bf16 %v1668_v36 }
  0x32   :  { %371 = vmatpush.bf16.msra.mxu2 %v1133_v8  ;;  %384 = vmatpush.bf16.msra.mxu3 %v1137_v12  ;;  %v1601_v43 = vld [vmem:[#allocation8 + $0xf4] sm:$0xf0]  ;;  %v124_v49 = vadd.f32 %v1657_v31, %v123_v38  ;;  %v1468_v50 = vld [vmem:[#allocation8 + $0x1f0] sm:$0xf]  ;;  %v1277_v53 = vor.u32 %v1585_v40, %v1276_v39  ;;  %v1332_v59 = vld [vmem:[#allocation8 + $0xe0] sm:$0xf]  ;;  %v1269_v5 = vor.u32 %v1583_v58, %v1268_v57 }
  0x33   :  { %v1617_v45 = vld [vmem:[#allocation8 + $0x174] sm:$0xf0]  ;;  %v1341_v56 = vor.u32 %v1601_v43, %v1340_v41  ;;  %v1599_v61 = vld [vmem:[#allocation8 + $0xe4] sm:$0xf0]  ;;  %v1396_v63 = vld [vmem:[#allocation8 + $0x160] sm:$0xf] }
  0x34   :  { %346 = vmatpush.bf16.msra.mxu0 %v1109_v22  ;;  %v1633_v51 = vld [vmem:[#allocation8 + $0x1f4] sm:$0xf0]  ;;  %v125_v55 = vadd.f32 %v1660_v37, %v124_v49  ;;  %v1405_v60 = vor.u32 %v1617_v45, %v1404_v44  ;;  %v1615_v0 = vld [vmem:[#allocation8 + $0x164] sm:$0xf0]  ;;  %v1460_v3 = vld [vmem:[#allocation8 + $0x1e0] sm:$0xf]  ;;  %v1333_v7 = vor.u32 %v1599_v61, %v1332_v59 }
  0x35   :  { %359 = vmatpush.bf16.msra.mxu1 %v1113_v26  ;;  %v1469_v62 = vor.u32 %v1633_v51, %v1468_v50  ;;  %v1631_v4 = vld [vmem:[#allocation8 + $0x1e4] sm:$0xf0]  ;;  %v1260_v8 = vld [vmem:[#allocation8 + $0x50] sm:$0xf]  ;;  %v1581_v9 = vld [vmem:[#allocation8 + $0x54] sm:$0xf0]  ;;  %v1397_v10 = vor.u32 %v1615_v0, %v1396_v63 }
  0x36   :  { %372 = vmatpush.bf16.msra.mxu2 %v1117_v27  ;;  %385 = vmatpush.bf16.msra.mxu3 %v1121_v33  ;;  %v126_v2 = vadd.f32 %v1661_v48, %v125_v55  ;;  %v1324_v11 = vld [vmem:[#allocation8 + $0xd0] sm:$0xf]  ;;  %v1597_v12 = vld [vmem:[#allocation8 + $0xd4] sm:$0xf0]  ;;  %v1461_v13 = vor.u32 %v1631_v4, %v1460_v3  ;;  %v1261_v20 = vor.u32 %v1581_v9, %v1260_v8  ;;  %v1252_v22 = vld [vmem:[#allocation8 + $0x40] sm:$0xf] }
  0x37   :  { %v1388_v14 = vld [vmem:[#allocation8 + $0x150] sm:$0xf]  ;;  %v1613_v16 = vld [vmem:[#allocation8 + $0x154] sm:$0xf0]  ;;  %v1325_v21 = vor.u32 %v1597_v12, %v1324_v11  ;;  %v1579_v23 = vld [vmem:[#allocation8 + $0x44] sm:$0xf0] }
  0x38   :  { %347 = vmatpush.bf16.msra.mxu0 %v1093_v42  ;;  %v127_v6 = vadd.f32 %v1664_v54, %v126_v2  ;;  %v1452_v17 = vld [vmem:[#allocation8 + $0x1d0] sm:$0xf]  ;;  %v1629_v18 = vld [vmem:[#allocation8 + $0x1d4] sm:$0xf0]  ;;  %v1316_v24 = vld [vmem:[#allocation8 + $0xc0] sm:$0xf]  ;;  %v1389_v26 = vor.u32 %v1613_v16, %v1388_v14  ;;  %v1253_v32 = vor.u32 %v1579_v23, %v1252_v22 }
  0x39   :  { %360 = vmatpush.bf16.msra.mxu1 %v1097_v46  ;;  %v1595_v25 = vld [vmem:[#allocation8 + $0xc4] sm:$0xf0]  ;;  %v1453_v27 = vor.u32 %v1629_v18, %v1452_v17  ;;  %v1380_v28 = vld [vmem:[#allocation8 + $0x140] sm:$0xf]  ;;  %v1244_v34 = vld [vmem:[#allocation8 + $0x30] sm:$0xf] }
  0x3a   :  { %373 = vmatpush.bf16.msra.mxu2 %v1101_v47  ;;  %386 = vmatpush.bf16.msra.mxu3 %v1105_v52  ;;  %v128_v15 = vadd.f32 %v1665_v1, %v127_v6  ;;  %v1611_v29 = vld [vmem:[#allocation8 + $0x144] sm:$0xf0]  ;;  %v1444_v30 = vld [vmem:[#allocation8 + $0x1c0] sm:$0xf]  ;;  %v1317_v33 = vor.u32 %v1595_v25, %v1316_v24  ;;  %v1577_v35 = vld [vmem:[#allocation8 + $0x34] sm:$0xf0] }
  0x3b   :  { %v1627_v31 = vld [vmem:[#allocation8 + $0x1c4] sm:$0xf0]  ;;  %v1308_v36 = vld [vmem:[#allocation8 + $0xb0] sm:$0xf]  ;;  %v1593_v37 = vld [vmem:[#allocation8 + $0xb4] sm:$0xf0]  ;;  %v1381_v38 = vor.u32 %v1611_v29, %v1380_v28  ;;  %v1245_v44 = vor.u32 %v1577_v35, %v1244_v34 }
  0x3c   :  { %789 = vmatpush.bf16.msrb.mxu0 %v1277_v53  ;;  %v138_v19 = vpack.c.bf16 %v128_v15, %v128_v15  ;;  %v1445_v39 = vor.u32 %v1627_v31, %v1444_v30  ;;  %v1372_v40 = vld [vmem:[#allocation8 + $0x130] sm:$0xf]  ;;  %v1609_v41 = vld [vmem:[#allocation8 + $0x134] sm:$0xf0]  ;;  %v1309_v45 = vor.u32 %v1593_v37, %v1308_v36  ;;  %v1236_v46 = vld [vmem:[#allocation8 + $0x20] sm:$0xf] }
  0x3d   :  { %802 = vmatpush.bf16.msrb.mxu1 %v1341_v56  ;;  %v1436_v42 = vld [vmem:[#allocation8 + $0x1b0] sm:$0xf]  ;;  %v1625_v43 = vld [vmem:[#allocation8 + $0x1b4] sm:$0xf0]  ;;  %v1575_v47 = vld [vmem:[#allocation8 + $0x24] sm:$0xf0]  ;;  %v1373_v50 = vor.u32 %v1609_v41, %v1372_v40 }
  0x3e   :  { %815 = vmatpush.bf16.msrb.mxu2 %v1405_v60  ;;  %828 = vmatpush.bf16.msrb.mxu3 %v1469_v62  ;;  %v1300_v48 = vld [vmem:[#allocation8 + $0xa0] sm:$0xf]  ;;  %v1591_v49 = vld [vmem:[#allocation8 + $0xa4] sm:$0xf0]  ;;  %v1437_v51 = vor.u32 %v1625_v43, %v1436_v42  ;;  %v1237_v56 = vor.u32 %v1575_v47, %v1236_v46  ;;  %v1228_v58 = vld [vmem:[#allocation8 + $0x10] sm:$0xf] }
  0x3f   :  { %348 = vmatmul.bf16.vlgmr.msra.gmra.mxu0 %v138_v19  ;;  %361 = vmatmul.bf16.vlgmr.msra.gmra.mxu1 %v138_v19  ;;  %v1364_v52 = vld [vmem:[#allocation8 + $0x120] sm:$0xf]  ;;  %v1607_v53 = vld [vmem:[#allocation8 + $0x124] sm:$0xf0]  ;;  %v1301_v57 = vor.u32 %v1591_v49, %v1300_v48  ;;  %v1573_v59 = vld [vmem:[#allocation8 + $0x14] sm:$0xf0] }
  0x40   :  { %790 = vmatpush.bf16.msrb.mxu0 %v1269_v5  ;;  %374 = vmatmul.bf16.vlgmr.msra.gmra.mxu2 %v138_v19  ;;  %v1428_v54 = vld [vmem:[#allocation8 + $0x1a0] sm:$0xf]  ;;  %v1623_v55 = vld [vmem:[#allocation8 + $0x1a4] sm:$0xf0]  ;;  %v1292_v60 = vld [vmem:[#allocation8 + $0x90] sm:$0xf]  ;;  %v1365_v62 = vor.u32 %v1607_v53, %v1364_v52  ;;  %v1229_v5 = vor.u32 %v1573_v59, %v1228_v58 }
  0x41   :  { %803 = vmatpush.bf16.msrb.mxu1 %v1333_v7  ;;  %387 = vmatmul.bf16.vlgmr.msra.gmra.mxu3 %v138_v19  ;;  %v1589_v61 = vld [vmem:[#allocation8 + $0x94] sm:$0xf0]  ;;  %v1429_v63 = vor.u32 %v1623_v55, %v1428_v54  ;;  %v1356_v0 = vld [vmem:[#allocation8 + $0x110] sm:$0xf]  ;;  %v1220_v4 = vld [vmem:[#allocation8] sm:$0xf] }
  0x42   :  { %816 = vmatpush.bf16.msrb.mxu2 %v1397_v10  ;;  %829 = vmatpush.bf16.msrb.mxu3 %v1461_v13  ;;  %v1605_v1 = vld [vmem:[#allocation8 + $0x114] sm:$0xf0]  ;;  %v1420_v2 = vld [vmem:[#allocation8 + $0x190] sm:$0xf]  ;;  %v1293_v6 = vor.u32 %v1589_v61, %v1292_v60  ;;  %v1571_v7 = vld [vmem:[#allocation8 + $0x4] sm:$0xf0] }
  0x43   :  { %v1621_v3 = vld [vmem:[#allocation8 + $0x194] sm:$0xf0]  ;;  %v1284_v8 = vld [vmem:[#allocation8 + $0x80] sm:$0xf]  ;;  %v1587_v9 = vld [vmem:[#allocation8 + $0x84] sm:$0xf0]  ;;  %v1357_v13 = vor.u32 %v1605_v1, %v1356_v0 }
  0x44   :  { %791 = vmatpush.bf16.msrb.mxu0 %v1261_v20  ;;  %v1584_v10 = vld [vmem:[#allocation8 + $0x74] sm:$0xf]  ;;  %v1278_v11 = vld [vmem:[#allocation8 + $0x78] sm:$0xf0]  ;;  %v1421_v14 = vor.u32 %v1621_v3, %v1420_v2  ;;  %v1348_v16 = vld [vmem:[#allocation8 + $0x100] sm:$0xf]  ;;  %v1285_v22 = vor.u32 %v1587_v9, %v1284_v8 }
  0x45   :  { %804 = vmatpush.bf16.msrb.mxu1 %v1325_v21  ;;  %v1600_v12 = vld [vmem:[#allocation8 + $0xf4] sm:$0xf]  ;;  %v1342_v15 = vld [vmem:[#allocation8 + $0xf8] sm:$0xf0]  ;;  %v1603_v17 = vld [vmem:[#allocation8 + $0x104] sm:$0xf0]  ;;  %v1221_v21 = vor.u32 %v1571_v7, %v1220_v4 }
  0x46   :  { %817 = vmatpush.bf16.msrb.mxu2 %v1389_v26  ;;  %830 = vmatpush.bf16.msrb.mxu3 %v1453_v27  ;;  %v1412_v18 = vld [vmem:[#allocation8 + $0x180] sm:$0xf]  ;;  %v1619_v19 = vld [vmem:[#allocation8 + $0x184] sm:$0xf0]  ;;  %v1616_v20 = vld [vmem:[#allocation8 + $0x174] sm:$0xf]  ;;  %v1281_v26 = vor.u32 %v1584_v10, %v1278_v11  ;;  %v1345_v27 = vor.u32 %v1600_v12, %v1342_v15 }
  0x47   :  { %v1406_v23 = vld [vmem:[#allocation8 + $0x178] sm:$0xf0]  ;;  %v1632_v24 = vld [vmem:[#allocation8 + $0x1f4] sm:$0xf]  ;;  %v1582_v28 = vld [vmem:[#allocation8 + $0x64] sm:$0xf] }
  0x48   :  { %792 = vmatpush.bf16.msrb.mxu0 %v1253_v32  ;;  %v1470_v25 = vld [vmem:[#allocation8 + $0x1f8] sm:$0xf0]  ;;  %v1270_v29 = vld [vmem:[#allocation8 + $0x68] sm:$0xf0]  ;;  %v1598_v30 = vld [vmem:[#allocation8 + $0xe4] sm:$0xf]  ;;  %v1349_v32 = vor.u32 %v1603_v17, %v1348_v16  ;;  %v1409_v34 = vor.u32 %v1616_v20, %v1406_v23 }
  0x49   :  { %805 = vmatpush.bf16.msrb.mxu1 %v1317_v33  ;;  %v1334_v31 = vld [vmem:[#allocation8 + $0xe8] sm:$0xf0]  ;;  %v1413_v33 = vor.u32 %v1619_v19, %v1412_v18  ;;  %v1473_v35 = vor.u32 %v1632_v24, %v1470_v25  ;;  %v1273_v36 = vor.u32 %v1582_v28, %v1270_v29  ;;  %v1596_v40 = vld [vmem:[#allocation8 + $0xd4] sm:$0xf]  ;;  %v1326_v42 = vld [vmem:[#allocation8 + $0xd8] sm:$0xf0] }
  0x4a   :  { %818 = vmatpush.bf16.msrb.mxu2 %v1381_v38  ;;  %831 = vmatpush.bf16.msrb.mxu3 %v1445_v39  ;;  %v1337_v37 = vor.u32 %v1598_v30, %v1334_v31  ;;  %v1580_v38 = vld [vmem:[#allocation8 + $0x54] sm:$0xf]  ;;  %v1262_v39 = vld [vmem:[#allocation8 + $0x58] sm:$0xf0]  ;;  %v1329_v43 = vor.u32 %v1596_v40, %v1326_v42  ;;  %v1630_v47 = vld [vmem:[#allocation8 + $0x1e4] sm:$0xf] }
  0x4b   :  { %v1265_v41 = vor.u32 %v1580_v38, %v1262_v39  ;;  %v1462_v48 = vld [vmem:[#allocation8 + $0x1e8] sm:$0xf0]  ;;  %v1594_v52 = vld [vmem:[#allocation8 + $0xc4] sm:$0xf]  ;;  %v1628_v58 = vld [vmem:[#allocation8 + $0x1d4] sm:$0xf] }
  0x4c   :  { %793 = vmatpush.bf16.msrb.mxu0 %v1245_v44  ;;  %v1614_v44 = vld [vmem:[#allocation8 + $0x164] sm:$0xf]  ;;  %v1465_v49 = vor.u32 %v1630_v47, %v1462_v48  ;;  %v1318_v54 = vld [vmem:[#allocation8 + $0xc8] sm:$0xf0]  ;;  %v1454_v60 = vld [vmem:[#allocation8 + $0x1d8] sm:$0xf0] }
  0x4d   :  { %806 = vmatpush.bf16.msrb.mxu1 %v1309_v45  ;;  %v1398_v45 = vld [vmem:[#allocation8 + $0x168] sm:$0xf0]  ;;  %v1321_v55 = vor.u32 %v1594_v52, %v1318_v54  ;;  %v1457_v61 = vor.u32 %v1628_v58, %v1454_v60  ;;  %v1592_v1 = vld [vmem:[#allocation8 + $0xb4] sm:$0xf]  ;;  %v1310_v2 = vld [vmem:[#allocation8 + $0xb8] sm:$0xf0] }
  0x4e   :  { %819 = vmatpush.bf16.msrb.mxu2 %v1373_v50  ;;  %832 = vmatpush.bf16.msrb.mxu3 %v1437_v51  ;;  %v1401_v46 = vor.u32 %v1614_v44, %v1398_v45  ;;  %v1578_v50 = vld [vmem:[#allocation8 + $0x44] sm:$0xf]  ;;  %v1254_v51 = vld [vmem:[#allocation8 + $0x48] sm:$0xf0]  ;;  %v1313_v3 = vor.u32 %v1592_v1, %v1310_v2  ;;  %v1608_v16 = vld [vmem:[#allocation8 + $0x134] sm:$0xf] }
  0x4f   :  { %v1257_v53 = vor.u32 %v1578_v50, %v1254_v51  ;;  %v1610_v4 = vld [vmem:[#allocation8 + $0x144] sm:$0xf]  ;;  %v1446_v8 = vld [vmem:[#allocation8 + $0x1c8] sm:$0xf0]  ;;  %v1374_v17 = vld [vmem:[#allocation8 + $0x138] sm:$0xf0] }
  0x50   :  { %794 = vmatpush.bf16.msrb.mxu0 %v1237_v56  ;;  %v1612_v56 = vld [vmem:[#allocation8 + $0x154] sm:$0xf]  ;;  %v1574_v10 = vld [vmem:[#allocation8 + $0x24] sm:$0xf]  ;;  %v1238_v11 = vld [vmem:[#allocation8 + $0x28] sm:$0xf0]  ;;  %v1377_v19 = vor.u32 %v1608_v16, %v1374_v17 }
  0x51   :  { %807 = vmatpush.bf16.msrb.mxu1 %v1301_v57  ;;  %v1390_v57 = vld [vmem:[#allocation8 + $0x158] sm:$0xf0]  ;;  %v1590_v12 = vld [vmem:[#allocation8 + $0xa4] sm:$0xf]  ;;  %v1624_v18 = vld [vmem:[#allocation8 + $0x1b4] sm:$0xf] }
  0x52   :  { %820 = vmatpush.bf16.msrb.mxu2 %v1365_v62  ;;  %833 = vmatpush.bf16.msrb.mxu3 %v1429_v63  ;;  %v1393_v59 = vor.u32 %v1612_v56, %v1390_v57  ;;  %v1576_v62 = vld [vmem:[#allocation8 + $0x34] sm:$0xf]  ;;  %v1246_v63 = vld [vmem:[#allocation8 + $0x38] sm:$0xf0]  ;;  %v1366_v28 = vld [vmem:[#allocation8 + $0x128] sm:$0xf0] }
  0x53   :  { %v1249_v0 = vor.u32 %v1576_v62, %v1246_v63  ;;  %v1438_v20 = vld [vmem:[#allocation8 + $0x1b8] sm:$0xf0]  ;;  %v1588_v24 = vld [vmem:[#allocation8 + $0x94] sm:$0xf]  ;;  %v1622_v31 = vld [vmem:[#allocation8 + $0x1a4] sm:$0xf] }
  0x54   :  { %795 = vmatpush.bf16.msrb.mxu0 %v1229_v5  ;;  %v1382_v5 = vld [vmem:[#allocation8 + $0x148] sm:$0xf0]  ;;  %v1230_v23 = vld [vmem:[#allocation8 + $0x18] sm:$0xf0]  ;;  %v1604_v40 = vld [vmem:[#allocation8 + $0x114] sm:$0xf] }
  0x55   :  { %808 = vmatpush.bf16.msrb.mxu1 %v1293_v6  ;;  %v1626_v6 = vld [vmem:[#allocation8 + $0x1c4] sm:$0xf]  ;;  %v1385_v7 = vor.u32 %v1610_v4, %v1382_v5  ;;  %v1620_v42 = vld [vmem:[#allocation8 + $0x194] sm:$0xf]  ;;  %v1422_v44 = vld [vmem:[#allocation8 + $0x198] sm:$0xf0] }
  0x56   :  { %821 = vmatpush.bf16.msrb.mxu2 %v1357_v13  ;;  %834 = vmatpush.bf16.msrb.mxu3 %v1421_v14  ;;  %v1449_v9 = vor.u32 %v1626_v6, %v1446_v8  ;;  %v1241_v13 = vor.u32 %v1574_v10, %v1238_v11  ;;  %v1302_v14 = vld [vmem:[#allocation8 + $0xa8] sm:$0xf0]  ;;  %v1425_v45 = vor.u32 %v1620_v42, %v1422_v44  ;;  %v1618_v48 = vld [vmem:[#allocation8 + $0x184] sm:$0xf]  ;;  %v135_v52 = vld [vmem:[#allocation11] sm:$0xf] }
  0x57   :  { %v1305_v15 = vor.u32 %v1590_v12, %v1302_v14  ;;  %v1350_v47 = vld [vmem:[#allocation8 + $0x108] sm:$0xf0]  ;;  %v173_v54 = vperm.slane %v135_v52, 1  ;;  %v175_v62 = vperm.slane %v135_v52, 3  ;;  %v1641_v63 = vld [vmem:[#allocation9 + $0x38] sm:$0xff]  ;;  %v1640_v8 = vld [vmem:[#allocation9 + $0x30] sm:$0xff] }
  0x58   :  { %796 = vmatpush.bf16.msrb.mxu0 %v1221_v21  ;;  %v1441_v21 = vor.u32 %v1624_v18, %v1438_v20  ;;  %v1414_v50 = vld [vmem:[#allocation8 + $0x188] sm:$0xf0]  ;;  %v1638_v16 = vld [vmem:[#allocation9 + $0x20] sm:$0xff]  ;;  %v1637_v17 = vld [vmem:[#allocation9 + $0x18] sm:$0xff]  ;;  %s1071_s29 = sshll.u32 %s1873_s28, 4  ;;  %s1073_s8 = sshll.u32 %s1936_s6, 4  ;;  %s1072_s29 = int_to_ptr.vmem [resolvable:$true] %s1071_s29  ;;  %s1074_s8 = int_to_ptr.hbm [resolvable:$true] %s1073_s8 }
  0x59   :  { %809 = vmatpush.bf16.msrb.mxu1 %v1285_v22  ;;  %v1572_v22 = vld [vmem:[#allocation8 + $0x14] sm:$0xf]  ;;  %v1417_v51 = vor.u32 %v1618_v48, %v1414_v50  ;;  %v1649_v18 = vld [vmem:[#allocation9 + $0x78] sm:$0xff] }
  0x5a   :  { %822 = vmatpush.bf16.msrb.mxu2 %v1349_v32  ;;  %835 = vmatpush.bf16.msrb.mxu3 %v1413_v33  ;;  %v1233_v25 = vor.u32 %v1572_v22, %v1230_v23  ;;  %v1430_v32 = vld [vmem:[#allocation8 + $0x1a8] sm:$0xf0]  ;;  %v1570_v33 = vld [vmem:[#allocation8 + $0x4] sm:$0xf]  ;;  %v1648_v20 = vld [vmem:[#allocation9 + $0x70] sm:$0xff] }
  0x5b   :  { %v1647_v22 = vld [vmem:[#allocation9 + $0x68] sm:$0xff]  ;;  %v1634_v23 = vld [vmem:[#allocation9] sm:$0xff] }
  0x5c   :  { %841 = vmatpush.bf16.msra.mxu0 %v1281_v26  ;;  %v1294_v26 = vld [vmem:[#allocation8 + $0x98] sm:$0xf0] }
  0x5d   :  { %854 = vmatpush.bf16.msra.mxu1 %v1345_v27  ;;  %v1606_v27 = vld [vmem:[#allocation8 + $0x124] sm:$0xf]  ;;  %v1297_v29 = vor.u32 %v1588_v24, %v1294_v26  ;;  %v1644_v26 = vld [vmem:[#allocation9 + $0x50] sm:$0xff] }
  0x5e   :  { %867 = vmatpush.bf16.msra.mxu2 %v1409_v34  ;;  %880 = vmatpush.bf16.msra.mxu3 %v1473_v35  ;;  %v1369_v30 = vor.u32 %v1606_v27, %v1366_v28  ;;  %v1433_v34 = vor.u32 %v1622_v31, %v1430_v32  ;;  %v1222_v35 = vld [vmem:[#allocation8 + $0x8] sm:$0xf0]  ;;  %v1646_v24 = vld [vmem:[#allocation9 + $0x60] sm:$0xff] }
  0x5f   :  { %v1225_v38 = vor.u32 %v1570_v33, %v1222_v35  ;;  %v1643_v27 = vld [vmem:[#allocation9 + $0x48] sm:$0xff]  ;;  %v136_v28 = vld [vmem:[#allocation11 + $0x4] sm:$0x3] }
  0x60   :  { %842 = vmatpush.bf16.msra.mxu0 %v1273_v36  ;;  %v1586_v36 = vld [vmem:[#allocation8 + $0x84] sm:$0xf]  ;;  %v465_v32 = vperm.slane %v136_v28, 0  ;;  %v466_v44 = vperm.slane %v136_v28, 1 }
  0x61   :  { %855 = vmatpush.bf16.msra.mxu1 %v1337_v37  ;;  %v1286_v37 = vld [vmem:[#allocation8 + $0x88] sm:$0xf0] }
  0x62   :  { %868 = vmatpush.bf16.msra.mxu2 %v1401_v46  ;;  %881 = vmatpush.bf16.msra.mxu3 %v1465_v49  ;;  %v1289_v39 = vor.u32 %v1586_v36, %v1286_v37  ;;  %v1602_v46 = vld [vmem:[#allocation8 + $0x104] sm:$0xf] }
  0x63   :  { %v1353_v49 = vor.u32 %v1602_v46, %v1350_v47 }
  0x64   :  { %843 = vmatpush.bf16.msra.mxu0 %v1265_v41  ;;  %v1358_v41 = vld [vmem:[#allocation8 + $0x118] sm:$0xf0] }
  0x65   :  { %856 = vmatpush.bf16.msra.mxu1 %v1329_v43  ;;  %v1361_v43 = vor.u32 %v1604_v40, %v1358_v41 }
  0x66   :  { %869 = vmatpush.bf16.msra.mxu2 %v1393_v59  ;;  %882 = vmatpush.bf16.msra.mxu3 %v1457_v61  ;;  %v174_v61 = vperm.slane %v135_v52, 2 }
  0x68   :  { %844 = vmatpush.bf16.msra.mxu0 %v1257_v53  ;;  %v172_v53 = vperm.slane %v135_v52, 0 }
  0x69   :  { %857 = vmatpush.bf16.msra.mxu1 %v1321_v55 }
  0x6a   :  { %870 = vmatpush.bf16.msra.mxu2 %v1385_v7  ;;  %883 = vmatpush.bf16.msra.mxu3 %v1449_v9 }
  0x6c   :  { %845 = vmatpush.bf16.msra.mxu0 %v1249_v0 }
  0x6d   :  { %858 = vmatpush.bf16.msra.mxu1 %v1313_v3 }
  0x6e   :  { %871 = vmatpush.bf16.msra.mxu2 %v1377_v19  ;;  %884 = vmatpush.bf16.msra.mxu3 %v1441_v21  ;;  %v1636_v19 = vld [vmem:[#allocation9 + $0x10] sm:$0xff]  ;;  %v1635_v21 = vld [vmem:[#allocation9 + $0x8] sm:$0xff] }
  0x70   :  { %846 = vmatpush.bf16.msra.mxu0 %v1241_v13  ;;  %v1639_v13 = vld [vmem:[#allocation9 + $0x28] sm:$0xff] }
  0x71   :  { %859 = vmatpush.bf16.msra.mxu1 %v1305_v15 }
  0x72   :  { %872 = vmatpush.bf16.msra.mxu2 %v1369_v30  ;;  %885 = vmatpush.bf16.msra.mxu3 %v1433_v34 }
  0x74   :  { %847 = vmatpush.bf16.msra.mxu0 %v1233_v25  ;;  %v1645_v25 = vld [vmem:[#allocation9 + $0x58] sm:$0xff] }
  0x75   :  { %860 = vmatpush.bf16.msra.mxu1 %v1297_v29  ;;  %v1642_v29 = vld [vmem:[#allocation9 + $0x40] sm:$0xff] }
  0x76   :  { %873 = vmatpush.bf16.msra.mxu2 %v1361_v43  ;;  %886 = vmatpush.bf16.msra.mxu3 %v1425_v45 }
  0x78   :  { %848 = vmatpush.bf16.msra.mxu0 %v1225_v38 }
  0x79   :  { %861 = vmatpush.bf16.msra.mxu1 %v1289_v39 }
  0x7a   :  { %874 = vmatpush.bf16.msra.mxu2 %v1353_v49  ;;  %887 = vmatpush.bf16.msra.mxu3 %v1417_v51 }
  0xbc   :  { %v349_v55 = vpop.f32.mrf.mxu0  ;;  %v362_v56 = vpop.f32.mrf.mxu1 }
  0xbd   :  { %v350_v57 = vadd.f32 %v349_v55, %v172_v53  ;;  %v363_v58 = vadd.f32 %v362_v56, %v173_v54 }
  0xbf   :  { %v392_v59 = vmax.f32 %v350_v57, 0.0  ;;  %v393_v60 = vmax.f32 %v363_v58, 0.0 }
  0xc1   :  { %v396_v0 = vpack.c.bf16 %v392_v59, %v392_v59  ;;  %v397_v1 = vpack.c.bf16 %v393_v60, %v393_v60  ;;  %v1682_v60 = vld [vmem:[#allocation11 + $0x6] ss:$0 sm:$0xff] }
  0xc3   :  { %v375_v2 = vpop.f32.mrf.mxu2  ;;  %797 = vmatmul.bf16.vlgmr.msrb.gmra.mxu0 %v396_v0  ;;  %810 = vmatmul.bf16.vlgmr.msrb.gmra.mxu1 %v397_v1 }
  0xc4   :  { %v388_v3 = vpop.f32.mrf.mxu3  ;;  %v376_v4 = vadd.f32 %v375_v2, %v174_v61  ;;  %v351_v6 = vpop.f32.mrf.mxu0  ;;  %1028 = vmatpush.bf16.msrb.mxu0 %v1641_v63  ;;  %1041 = vmatpush.bf16.msrb.mxu1 %v1649_v18 }
  0xc5   :  { %v389_v5 = vadd.f32 %v388_v3, %v175_v62  ;;  %v364_v7 = vpop.f32.mrf.mxu1 }
  0xc6   :  { %v394_v9 = vmax.f32 %v376_v4, 0.0 }
  0xc7   :  { %v395_v10 = vmax.f32 %v389_v5, 0.0 }
  0xc8   :  { %v398_v11 = vpack.c.bf16 %v394_v9, %v394_v9  ;;  %1029 = vmatpush.bf16.msrb.mxu0 %v1640_v8  ;;  %1042 = vmatpush.bf16.msrb.mxu1 %v1648_v20 }
  0xc9   :  { %v399_v12 = vpack.c.bf16 %v395_v10, %v395_v10 }
  0xca   :  { %823 = vmatmul.bf16.vlgmr.msrb.gmra.mxu2 %v398_v11 }
  0xcb   :  { %836 = vmatmul.bf16.vlgmr.msrb.gmra.mxu3 %v399_v12  ;;  %v377_v14 = vpop.f32.mrf.mxu2 }
  0xcc   :  { %v390_v15 = vpop.f32.mrf.mxu3  ;;  %1030 = vmatpush.bf16.msrb.mxu0 %v1639_v13  ;;  %1043 = vmatpush.bf16.msrb.mxu1 %v1647_v22 }
  0xd0   :  { %1031 = vmatpush.bf16.msrb.mxu0 %v1638_v16  ;;  %1044 = vmatpush.bf16.msrb.mxu1 %v1646_v24 }
  0xd3   :  { %849 = vmatmul.bf16.vlgmr.msra.gmra.mxu0 %v396_v0  ;;  %862 = vmatmul.bf16.vlgmr.msra.gmra.mxu1 %v397_v1 }
  0xd4   :  { %1032 = vmatpush.bf16.msrb.mxu0 %v1637_v17  ;;  %1045 = vmatpush.bf16.msrb.mxu1 %v1645_v25 }
  0xd8   :  { %1033 = vmatpush.bf16.msrb.mxu0 %v1636_v19  ;;  %1046 = vmatpush.bf16.msrb.mxu1 %v1644_v26 }
  0xda   :  { %875 = vmatmul.bf16.vlgmr.msra.gmra.mxu2 %v398_v11 }
  0xdb   :  { %888 = vmatmul.bf16.vlgmr.msra.gmra.mxu3 %v399_v12 }
  0xdc   :  { %1034 = vmatpush.bf16.msrb.mxu0 %v1635_v21  ;;  %1047 = vmatpush.bf16.msrb.mxu1 %v1643_v27 }
  0xe0   :  { %1035 = vmatpush.bf16.msrb.mxu0 %v1634_v23  ;;  %1048 = vmatpush.bf16.msrb.mxu1 %v1642_v29 }
 0x140   :  { %v798_v30 = vpop.f32.mrf.mxu0  ;;  %v811_v31 = vpop.f32.mrf.mxu1 }
 0x141   :  { %v799_v33 = vadd.f32 %v798_v30, %v465_v32 }
 0x143   :  { %v812_v36 = vadd.f32 %v811_v31, %v799_v33 }
 0x148   :  { %v800_v34 = vpop.f32.mrf.mxu0  ;;  %v813_v35 = vpop.f32.mrf.mxu1 }
 0x14d   :  { %v824_v37 = vpop.f32.mrf.mxu2 }
 0x14e   :  { %v837_v38 = vpop.f32.mrf.mxu3  ;;  %v825_v39 = vadd.f32 %v824_v37, %v812_v36 }
 0x150   :  { %v838_v40 = vadd.f32 %v837_v38, %v825_v39  ;;  %v850_v41 = vpop.f32.mrf.mxu0  ;;  %v863_v42 = vpop.f32.mrf.mxu1 }
 0x151   :  { %v851_v47 = vadd.f32 %v850_v41, %v466_v44 }
 0x152   :  { %893 = vst [vmem:[#allocation12] sm:$0xff] %v838_v40  ;;  %v895_v43 = vpack.c.bf16 %v838_v40, %v838_v40 }
 0x153   :  { %v864_v50 = vadd.f32 %v863_v42, %v851_v47 }
 0x154   :  { %1036 = vmatmul.bf16.vlgmr.msrb.gmra.mxu0 %v895_v43 }
 0x155   :  { %v826_v45 = vpop.f32.mrf.mxu2 }
 0x156   :  { %v839_v46 = vpop.f32.mrf.mxu3 }
 0x158   :  { %v852_v48 = vpop.f32.mrf.mxu0  ;;  %v865_v49 = vpop.f32.mrf.mxu1 }
 0x15d   :  { %v876_v51 = vpop.f32.mrf.mxu2 }
 0x15e   :  { %v889_v52 = vpop.f32.mrf.mxu3  ;;  %v877_v53 = vadd.f32 %v876_v51, %v864_v50 }
 0x160   :  { %v890_v54 = vadd.f32 %v889_v52, %v877_v53 }
 0x162   :  { %894 = vst [vmem:[#allocation12 + $0x8] sm:$0xff] %v890_v54  ;;  %v896_v55 = vpack.c.bf16 %v890_v54, %v890_v54 }
 0x163   :  { %1065 = dma.vmem_to_hbm [thread:$0]  %s1061_s4, 256, %s1063_s27, [#allocation5]  }
 0x164   :  { %1049 = vmatmul.bf16.vlgmr.msrb.gmra.mxu1 %v896_v55 }
 0x165   :  { %v878_v56 = vpop.f32.mrf.mxu2 }
 0x166   :  { %v891_v57 = vpop.f32.mrf.mxu3 }
 0x1d1   :  { %v1037_v58 = vpop.f32.mrf.mxu0 }
 0x1d2   :  { %v1038_v61 = vadd.f32 %v1682_v60, %v1037_v58 }
 0x1d9   :  { %v1039_v59 = vpop.f32.mrf.mxu0 }
 0x1e1   :  { %v1050_v62 = vpop.f32.mrf.mxu1 }
 0x1e2   :  { %v1051_v63 = vadd.f32 %v1050_v62, %v1038_v61 }
 0x1e4   :  { %1054 = vst [vmem:[#allocation13] sm:$0xff] %v1051_v63 }
 0x1e5   :  { %1076 = dma.vmem_to_hbm [thread:$0]  %s1072_s29, 128, %s1074_s8, [#allocation14]  }
 0x1e9   :  { %v1052_v0 = vpop.f32.mrf.mxu1 }
 0x1ea   :  { %1857 = dma.done.wait [#allocation5], 256  }
 0x1eb   :  { %1858 = vsyncadd [#allocation5], 4294967040 }
 0x1ec   :  { %1859 = dma.done.wait [#allocation14], 128  }
 0x1ed   :  { %1860 = vsyncadd [#allocation14], 4294967168 }
 0x1ee   :  { %1085 = vsyncpa [#allocation4], 1 }
 0x1ef   :  { %1086 = vsyncpa [#allocation7], 1 }
 0x1f0   :  { %1087 = vsyncpa [#allocation10], 1 }
 0x1f1   :  { %1088 = vsyncpa [#allocation5], 1 }
 0x1f2   :  { %1089 = vsyncpa [#allocation14], 1 }

</bundles_post_ra>
